<compile_context>
chip_gen: v7x
topology: tpu7x:2x2x1
jax: 0.10.0
libtpu: 0.0.40
codegen_flags: <defaults>
</compile_context>

<pallas_src>
import functools
import math

import jax
import jax.numpy as jnp
from jax.experimental import pallas as pl
from jax.experimental.pallas import tpu as pltpu


def _rmsnorm_kernel(x_ref, w_ref, o_ref, *, eps: float, inv_dim: float):
    # x_ref: (tile_rows, dim_p), w_ref: (1, dim_p), o_ref: (tile_rows, dim_p)
    x = x_ref[...]
    x_f32 = x.astype(jnp.float32)                        # x.float()
    # Padded lanes are zero-filled, so sum == sum over true dim; divide by the
    # true dim (not the padded one) to get an exact mean.
    ms = jnp.sum(x_f32 * x_f32, axis=-1, keepdims=True) * inv_dim
    normed = x_f32 * jax.lax.rsqrt(ms + eps)             # x * rsqrt(ms + eps)
    normed = normed.astype(x.dtype)                      # .type_as(x)  (PyTorch semantics)
    o_ref[...] = (normed * w_ref[...]).astype(o_ref.dtype)  # * weight


def _vmem_capacity_bytes() -> int:
    """Physical VMEM per TensorCore; conservative fallback = 64 MiB (v7x)."""
    try:
        info = pltpu.get_tpu_info()
        for attr in ("vmem_capacity_bytes", "vmem_size_bytes", "vmem_bytes"):
            v = getattr(info, attr, None)
            if v:
                return int(v)
    except Exception:
        pass
    return 64 * 1024 * 1024


def _choose_tile_rows(rows: int, dim_p: int, in_bytes: int, out_bytes: int,
                      row_align: int) -> int:
    vmem_cap = _vmem_capacity_bytes()
    # Spend ~half of physical VMEM on the double-buffered in/out row tiles;
    # the rest is headroom for the weight buffers and compiler scratch.
    budget = max(vmem_cap // 2, 4 << 20)
    per_row = 2 * dim_p * (in_bytes + out_bytes)          # 2x (double buffer)
    tile = (budget // per_row) // row_align * row_align
    # >= 512 rows is already near the HBM roofline; bigger only adds VMEM use.
    tile = max(row_align, min(tile, 1024))
    if rows <= tile:
        # One step covers everything: shrink to just cover the rows.
        tile = ((rows + row_align - 1) // row_align) * row_align
    elif rows < 2 * tile:
        # Keep >= 2 grid steps so the parallel axis can shard across the two
        # v7x TensorCores instead of leaving one idle.
        half = (rows + 1) // 2
        tile = ((half + row_align - 1) // row_align) * row_align
    return max(row_align, tile)


def rmsnorm(x, weight, eps: float = 1e-6, *, out_dtype=None, tile_rows=None):
    """RMSNorm over the last axis of x, scaled by `weight` (shape (dim,))."""
    orig_shape = x.shape
    dim = orig_shape[-1]
    rows = math.prod(orig_shape[:-1]) if len(orig_shape) > 1 else 1

    # Output dtype: PyTorch promotion of (x-dtype * f32 weight) by default,
    # overridable (e.g. bf16) to halve store traffic when the caller allows.
    if out_dtype is None:
        out_dtype = jnp.promote_types(x.dtype, weight.dtype)

    in_bytes = jnp.dtype(x.dtype).itemsize
    out_bytes = jnp.dtype(out_dtype).itemsize
    w_bytes = jnp.dtype(weight.dtype).itemsize
    # Sublane packing: 8 rows/vreg for 32-bit, 16 for 16-bit, 32 for 8-bit.
    row_align = max(8, 32 // min(in_bytes, out_bytes))

    # Lane-dense last dim: pad to a multiple of 128 so stores are unmasked vst.
    dim_p = ((dim + 127) // 128) * 128

    if tile_rows is None:
        tile_rows = _choose_tile_rows(rows, dim_p, in_bytes, out_bytes, row_align)
    else:
        tile_rows = ((tile_rows + row_align - 1) // row_align) * row_align

    rows_p = pl.cdiv(rows, tile_rows) * tile_rows
    grid = (rows_p // tile_rows,)

    x2d = x.reshape(rows, dim)
    w2d = weight.reshape(1, dim)
    if rows_p != rows or dim_p != dim:
        # Zero padding: padded lanes don't perturb the (true-dim) mean and
        # padded rows produce finite zeros that get sliced off below.
        x2d = jnp.pad(x2d, ((0, rows_p - rows), (0, dim_p - dim)))
    if dim_p != dim:
        w2d = jnp.pad(w2d, ((0, 0), (0, dim_p - dim)))

    # Explicit VMEM limit: double-buffered in/out tiles + weight + headroom,
    # capped at the device's physical VMEM.
    working = (2 * tile_rows * dim_p * (in_bytes + out_bytes)
               + 2 * dim_p * w_bytes)
    vmem_limit = int(min(_vmem_capacity_bytes(),
                         max(working + (4 << 20), 32 << 20)))

    kernel = functools.partial(_rmsnorm_kernel, eps=eps, inv_dim=1.0 / dim)
    out = pl.pallas_call(
        kernel,
        out_shape=jax.ShapeDtypeStruct((rows_p, dim_p), out_dtype),
        grid_spec=pltpu.PrefetchScalarGridSpec(
            num_scalar_prefetch=0,
            grid=grid,
            in_specs=[
                pl.BlockSpec((tile_rows, dim_p), lambda i: (i, 0)),
                # Constant block index -> no re-DMA of the weight per step.
                pl.BlockSpec((1, dim_p), lambda i: (0, 0)),
            ],
            out_specs=pl.BlockSpec((tile_rows, dim_p), lambda i: (i, 0)),
        ),
        compiler_params=pltpu.CompilerParams(
            dimension_semantics=("parallel",),
            vmem_limit_bytes=vmem_limit,
        ),
    )(x2d, w2d)

    out = out[:rows, :dim]
    return out.reshape(orig_shape[:-1] + (dim,))


def _reference(x, weight, eps):
    x_f32 = x.astype(jnp.float32)
    normed = x_f32 * jax.lax.rsqrt(
        jnp.mean(x_f32 * x_f32, axis=-1, keepdims=True) + eps
    )
    return normed.astype(x.dtype) * weight


if __name__ == "__main__":
    key = jax.random.PRNGKey(0)

    # --- Test 1: f32, hidden not a multiple of 128 (exercises lane padding).
    batch, seq, hidden = 2, 8, 32
    k1, k2 = jax.random.split(key)
    x = jax.random.normal(k1, (batch, seq, hidden), dtype=jnp.float32)
    weight = jnp.ones((hidden,), dtype=jnp.float32) + 0.01 * jnp.arange(
        hidden, dtype=jnp.float32) / hidden

    out = jax.block_until_ready(rmsnorm(x, weight, eps=1e-6))
    ref = _reference(x, weight, 1e-6)
    assert out.shape == x.shape
    assert out.dtype == ref.dtype
    assert jnp.allclose(out, ref, atol=1e-5, rtol=1e-5)

    # --- Test 2: bf16 activations, odd row count (exercises row padding) and
    # PyTorch-style promotion to f32 output.
    b2, s2, h2 = 2, 7, 160
    xb = jax.random.normal(k2, (b2, s2, h2), dtype=jnp.bfloat16)
    wb = jnp.ones((h2,), dtype=jnp.float32) + 0.02 * jnp.arange(
        h2, dtype=jnp.float32) / h2

    out_b = jax.block_until_ready(rmsnorm(xb, wb, eps=1e-6))
    ref_b = _reference(xb, wb, 1e-6)
    assert out_b.shape == xb.shape
    assert out_b.dtype == ref_b.dtype
    assert jnp.allclose(out_b, ref_b, atol=2e-2, rtol=2e-2)

    # Optional low-traffic output path (bf16 out) still matches to bf16 tol.
    out_b16 = jax.block_until_ready(rmsnorm(xb, wb, eps=1e-6, out_dtype=jnp.bfloat16))
    assert out_b16.dtype == jnp.bfloat16
    assert jnp.allclose(out_b16.astype(jnp.float32), ref_b, atol=3e-2, rtol=3e-2)

    print("KERNEL_OK")
</pallas_src>

<mosaic_0001>
module attributes {stable_mosaic.version = 11 : i64} {
  func.func @_rmsnorm_kernel(%arg0: i32, %arg1: memref<16x128xf32, #tpu.memory_space<vmem>>, %arg2: memref<1x128xf32, #tpu.memory_space<vmem>>, %arg3: memref<16x128xf32, #tpu.memory_space<vmem>>) attributes {dimension_semantics = [#tpu.dimension_semantics<parallel>], iteration_bounds = array<i64: 1>, scalar_prefetch = 0 : i64, scratch_operands = 0 : i64, tpu.core_type = #tpu.core_type<tc>, window_params = [{transform_indices = @transform_0, window_bounds = array<i64: 16, 128>}, {pipeline_mode = #tpu.pipeline_mode<synchronous>, transform_indices = @transform_1, window_bounds = array<i64: 1, 128>}, {transform_indices = @transform_2, window_bounds = array<i64: 16, 128>}]} {
    %c0 = arith.constant 0 : index
    %c0_0 = arith.constant 0 : index
    %0 = vector.load %arg1[%c0, %c0_0] : memref<16x128xf32, #tpu.memory_space<vmem>>, vector<16x128xf32>
    %1 = arith.mulf %0, %0 : vector<16x128xf32>
    %cst = arith.constant dense<0.000000e+00> : vector<16xf32>
    %2 = vector.multi_reduction <add>, %1, %cst [1] : vector<16x128xf32> to vector<16xf32>
    %3 = vector.shape_cast %2 : vector<16xf32> to vector<16x1xf32>
    %cst_1 = arith.constant 3.125000e-02 : f32
    %4 = vector.broadcast %cst_1 : f32 to vector<16x1xf32>
    %5 = arith.mulf %3, %4 : vector<16x1xf32>
    %cst_2 = arith.constant 9.99999997E-7 : f32
    %6 = vector.broadcast %cst_2 : f32 to vector<16x1xf32>
    %7 = arith.addf %5, %6 : vector<16x1xf32>
    %8 = math.rsqrt %7 : vector<16x1xf32>
    %9 = vector.broadcast %8 : vector<16x1xf32> to vector<16x128xf32>
    %10 = arith.mulf %0, %9 : vector<16x128xf32>
    %c0_3 = arith.constant 0 : index
    %c0_4 = arith.constant 0 : index
    %11 = vector.load %arg2[%c0_3, %c0_4] : memref<1x128xf32, #tpu.memory_space<vmem>>, vector<1x128xf32>
    %12 = vector.broadcast %11 : vector<1x128xf32> to vector<16x128xf32>
    %13 = arith.mulf %10, %12 : vector<16x128xf32>
    %c0_5 = arith.constant 0 : index
    %c0_6 = arith.constant 0 : index
    %14 = vector.load %arg3[%c0_5, %c0_6] : memref<16x128xf32, #tpu.memory_space<vmem>>, vector<16x128xf32>
    tpu.vector_store %arg3[%c0_5, %c0_6], %13 {strides = array<i32>} : memref<16x128xf32, #tpu.memory_space<vmem>>, vector<16x128xf32>,
    return
  }
  func.func @transform_0(%arg0: i32) -> (i32, i32) {
    %c0_i32 = arith.constant 0 : i32
    %c0_i32_0 = arith.constant 0 : i32
    return %arg0, %c0_i32 : i32, i32
  }
  func.func @transform_1(%arg0: i32) -> (i32, i32) {
    %c0_i32 = arith.constant 0 : i32
    %c0_i32_0 = arith.constant 0 : i32
    %c0_i32_1 = arith.constant 0 : i32
    return %c0_i32, %c0_i32_0 : i32, i32
  }
  func.func @transform_2(%arg0: i32) -> (i32, i32) {
    %c0_i32 = arith.constant 0 : i32
    %c0_i32_0 = arith.constant 0 : i32
    return %arg0, %c0_i32 : i32, i32
  }
}

</mosaic_0001>

<bundles_post_ra>
// kernel: tpu_custom_call.1
= control target key start
LH: loop header
LB: loop body
LE: loop exit
PB: predicated region body
PF: predicated region fallthrough
CT: control target
= control target key end

     0   :  { %7 = vsyncpa [#allocation3], 0  ;;  %s179_s0 = inlined_call_operand.hbm [shape: f32[16,128], index: 0, kind: input, shape index: {}]   ;;  %s180_s1 = inlined_call_operand.vmem [shape: f32[1,128], index: 1, kind: input, shape index: {}]   ;;  %s181_s2 = inlined_call_operand.hbm [shape: f32[16,128], index: 2, kind: output, shape index: {}]  }
   0x1   :  { %8 = vsyncpa [#allocation4], 0  ;;  %s127_s9 = smov [#allocation2]   ;;  %s79_s13 = scalar_lea.hbm %s179_s0, 256 }
   0x2   :  { %s14_s10 = sshll.u32 %s127_s9, 4  ;;  %p80_p0 = scmp.ne.s32.totalorder %s179_s0, %s79_s13  ;;  %s15_s10 = int_to_ptr.vmem [resolvable:$true] %s14_s10 }
   0x3   :  { %p83_p1 = scmp.lt.u32.totalorder %s79_s13, %s179_s0 }
   0x5   :  { %p85_p2 = pnand %p83_p1, %p80_p0 }
   0x7   :  { %88 = shalt.err (!%p85_p2)
}
   0x8   :  { %s89_s18 = scalar_lea.vmem %s15_s10, 256  ;;  %p94_p4 = scmp.lt.s32.totalorder %s15_s10, %s15_s10 }
   0x9   :  { %p90_p3 = scmp.ne.s32.totalorder %s15_s10, %s89_s18  ;;  %p95_p5 = scmp.lt.s32.totalorder %s89_s18, %s89_s18 }
   0xb   :  { %p96_p6 = por %p95_p5, %p94_p4 }
   0xd   :  { %p97_p7 = pnand %p96_p6, %p90_p3 }
   0xf   :  { %100 = shalt.err (!%p97_p7)
}
  0x10   :  { %s128_s19 = smov 128   ;;  %s129_s20 = smov 8  }
  0x11   :  { %20 = dma.hbm_to_vmem [thread:$0]  %s179_s0, 256, %s15_s10, [#allocation3], %s128_s19, %s128_s19, %s129_s20  }
  0x12   :  { %123 = dma.done.wait [#allocation3], 256  }
  0x13   :  { %124 = vsyncadd [#allocation3], 4294967040  ;;  %v26_v0 = vld [vmem:[#allocation2] sm:$0xff]  ;;  %v27_v1 = vld [vmem:[#allocation2 + $0x8] sm:$0xff]  ;;  %s130_s0 = smov [#allocation5]  }
  0x14   :  { %v28_v2 = vmul.f32 %v26_v0, %v26_v0  ;;  %v29_v3 = vmul.f32 %v27_v1, %v27_v1  ;;  %v70_v11 = vld [vmem:[%s180_s1] ss:$0 sm:$0xff]  ;;  %s58_s25 = sshll.u32 %s130_s0, 4  ;;  %s59_s25 = int_to_ptr.vmem [resolvable:$true] %s58_s25 }
  0x15   :  { %s101_s26 = scalar_lea.vmem %s59_s25, 256  ;;  %p106_p9 = scmp.lt.s32.totalorder %s59_s25, %s59_s25 }
  0x16   :  { %30 = vadd.xlane.f32.xlu0 %v28_v2  ;;  %p102_p8 = scmp.ne.s32.totalorder %s59_s25, %s101_s26  ;;  %p107_p10 = scmp.lt.s32.totalorder %s101_s26, %s101_s26 }
  0x18   :  { %p108_p11 = por %p107_p10, %p106_p9 }
  0x1a   :  { %32 = vadd.xlane.f32.xlu0 %v29_v3  ;;  %p109_p12 = pnand %p108_p11, %p102_p8 }
  0xa3   :  { %v31_v4 = vpop.xlane.xlu0 %30 }
  0xa4   :  { %v34_v5 = vmul.f32 0.03125, %v31_v4 }
  0xa6   :  { %v36_v6 = vadd.f32 1e-06, %v34_v5 }
  0xa7   :  { %v33_v7 = vpop.xlane.xlu0 %32 }
  0xa8   :  { %75 = vrsqrt.f32 %v36_v6  ;;  %v35_v8 = vmul.f32 0.03125, %v33_v7 }
  0xaa   :  { %v37_v9 = vadd.f32 1e-06, %v35_v8 }
  0xac   :  { %77 = vrsqrt.f32 %v37_v9 }
  0xb2   :  { %v76_v10 = vpop.eup %75 }
  0xb3   :  { %v40_v12 = vmul.f32 %v76_v10, %v26_v0 }
  0xb5   :  { %v49_v13 = vmul.f32 %v70_v11, %v40_v12 }
  0xb6   :  { %v78_v14 = vpop.eup %77 }
  0xb7   :  { %v41_v15 = vmul.f32 %v78_v14, %v27_v1  ;;  %51 = vst [vmem:[#allocation5] sm:$0xff] %v49_v13 }
  0xb9   :  { %v50_v16 = vmul.f32 %v70_v11, %v41_v15 }
  0xbb   :  { %52 = vst [vmem:[#allocation5 + $0x8] sm:$0xff] %v50_v16 }
  0xbc   :  { %112 = shalt.err (!%p109_p12)
}
  0xbd   :  { %s113_s1 = scalar_lea.hbm %s181_s2, 256 }
  0xbe   :  { %p114_p13 = scmp.ne.s32.totalorder %s181_s2, %s113_s1  ;;  %p117_p0 = scmp.lt.u32.totalorder %s113_s1, %s181_s2 }
  0xc0   :  { %p119_p1 = pnand %p117_p0, %p114_p13 }
  0xc2   :  { %122 = shalt.err (!%p119_p1)
}
  0xc3   :  { %64 = dma.vmem_to_hbm [thread:$0]  %s59_s25, 256, %s181_s2, [#allocation4], %s128_s19, %s128_s19, %s129_s20  }
  0xc4   :  { %125 = dma.done.wait [#allocation4], 256  }
  0xc5   :  { %126 = vsyncadd [#allocation4], 4294967040 }
  0xc6   :  { %68 = vsyncpa [#allocation3], 1 }
  0xc7   :  { %69 = vsyncpa [#allocation4], 1 }

</bundles_post_ra>
